<compile_context>
chip_gen: v7x
topology: tpu7x:2x2x1
jax: 0.10.0
libtpu: 0.0.40
codegen_flags: <defaults>
</compile_context>

<pallas_src>
import jax
import jax.numpy as jnp
from jax.experimental import pallas as pl
from jax.experimental.pallas import tpu as pltpu

OUT_LANES = 128  # minimum unmasked-vst lane width for the fused output slab


def _round_up_to(x, m):
    return ((x + m - 1) // m) * m


def agent_kernel(x_ref, g_ref, w1_ref, b1_ref, w2_ref, b2_ref, out_ref):
    # ---- network: MLP (obs -> hidden -> num_actions); bf16 MXU, f32 acc ----
    x = x_ref[...].astype(jnp.bfloat16)                               # (TB, obs)
    h = jnp.dot(x, w1_ref[...], preferred_element_type=jnp.float32) + b1_ref[...]
    h = jnp.maximum(h, 0.0)                                           # ReLU
    logits = (jnp.dot(h.astype(jnp.bfloat16), w2_ref[...],
                      preferred_element_type=jnp.float32)
              + b2_ref[...])                                          # (TB, A)

    # ---- Categorical: stable log-softmax + per-sample entropy -------------
    m = jnp.max(logits, axis=-1, keepdims=True)
    z = logits - m
    ez = jnp.exp(z)
    sum_ez = jnp.sum(ez, axis=-1, keepdims=True)
    logp = z - jnp.log(sum_ez)                                        # (TB, A)
    p = ez / sum_ez
    ent = -jnp.sum(p * logp, axis=-1, keepdims=True)                  # (TB, 1)

    # ---- sample actions (actions=None path) via Gumbel-max ----------------
    pert = logits + g_ref[...]                                        # host-drawn Gumbel noise
    tb, a = logits.shape
    col = jax.lax.broadcasted_iota(jnp.int32, (tb, a), 1)
    row_max = jnp.max(pert, axis=-1, keepdims=True)
    actions = jnp.min(jnp.where(pert >= row_max, col, jnp.int32(a)),
                      axis=-1, keepdims=True)                         # (TB, 1) int32

    # log-prob of the chosen action (one-hot dot; avoids dynamic gather)
    one_hot = (col == actions).astype(jnp.float32)
    lp_sel = jnp.sum(logp * one_hot, axis=-1, keepdims=True)          # (TB, 1)

    # ---- single lane-dense (TB, 128) output slab ---------------------------
    lane = jax.lax.broadcasted_iota(jnp.int32, (tb, OUT_LANES), 1)
    slab = jnp.where(lane == 0, actions.astype(jnp.float32), 0.0)
    slab = slab + jnp.where(lane == 1, lp_sel, 0.0)
    slab = slab + jnp.where(lane == 2, ent, 0.0)
    out_ref[...] = slab


def agent_forward(states, params, key, *, tile_b=512):
    """states: (B, obs) f32. Returns (actions (B,) i32, logprobs (B,), entropy (B,))."""
    w1, b1, w2, b2 = params
    B, obs = states.shape
    hid = w1.shape[1]
    A = w2.shape[1]

    # Row tile: multiple of 8 sublanes. 512 keeps the double-buffered working
    # set (<1 MiB here) far below even v7x's 64 MiB VMEM while amortizing the
    # ~0.35us per-grid-step overhead.
    # TODO(synk): bump toward 2048 on v5e/v6e (128 MiB VMEM) if obs_dim grows.
    TB = min(tile_b, _round_up_to(B, 8))
    num_tiles = pl.cdiv(B, TB)
    Bp = num_tiles * TB

    xp = states if Bp == B else jnp.pad(states, ((0, Bp - B), (0, 0)))
    # Host-side Gumbel(0,1) noise, one draw per (row, action): no cross-tile
    # correlation and no TPU-only PRNG primitives inside the kernel.
    g = jax.random.gumbel(key, (Bp, A), jnp.float32)

    w1b = w1.astype(jnp.bfloat16)
    w2b = w2.astype(jnp.bfloat16)
    b1f = b1.reshape(1, hid).astype(jnp.float32)
    b2f = b2.reshape(1, A).astype(jnp.float32)

    cost = pl.CostEstimate(
        flops=2 * Bp * (obs * hid + hid * A),
        transcendentals=3 * Bp * A,
        bytes_accessed=(Bp * obs * 4 + Bp * A * 4           # states + noise
                        + (obs * hid + hid * A) * 2          # bf16 weights
                        + (hid + A) * 4                      # biases
                        + Bp * OUT_LANES * 4),               # output slab
    )

    out = pl.pallas_call(
        agent_kernel,
        out_shape=jax.ShapeDtypeStruct((Bp, OUT_LANES), jnp.float32),
        grid=(num_tiles,),
        in_specs=[
            pl.BlockSpec((TB, obs), lambda i: (i, 0)),   # states tile (pipelined)
            pl.BlockSpec((TB, A), lambda i: (i, 0)),     # gumbel-noise tile
            pl.BlockSpec((obs, hid), lambda i: (0, 0)),  # w1 (VMEM-resident)
            pl.BlockSpec((1, hid), lambda i: (0, 0)),    # b1
            pl.BlockSpec((hid, A), lambda i: (0, 0)),    # w2
            pl.BlockSpec((1, A), lambda i: (0, 0)),      # b2
        ],
        out_specs=pl.BlockSpec((TB, OUT_LANES), lambda i: (i, 0)),
        compiler_params=pltpu.CompilerParams(
            dimension_semantics=("parallel",)),
        cost_estimate=cost,
    )(xp, g, w1b, b1f, w2b, b2f)

    actions = out[:B, 0].astype(jnp.int32)
    logprobs = out[:B, 1]
    entropy = out[:B, 2]
    return actions, logprobs, entropy


def make_params(key, obs_dim, hidden, num_actions):
    k1, k2, k3, k4 = jax.random.split(key, 4)
    w1 = jax.random.normal(k1, (obs_dim, hidden), jnp.float32) * 0.1
    b1 = jax.random.normal(k2, (1, hidden), jnp.float32) * 0.01
    w2 = jax.random.normal(k3, (hidden, num_actions), jnp.float32) * 0.1
    b2 = jax.random.normal(k4, (1, num_actions), jnp.float32) * 0.01
    return w1, b1, w2, b2


if __name__ == "__main__":
    B, OBS, HID, A = 8, 32, 32, 8

    key = jax.random.PRNGKey(0)
    kx, kp, ks = jax.random.split(key, 3)
    buffer = {"states": jax.random.normal(kx, (B, OBS), jnp.float32)}
    params = make_params(kp, OBS, HID, A)

    actions, logprobs, entropy = agent_forward(buffer["states"], params, ks)
    jax.block_until_ready((actions, logprobs, entropy))

    # sanity: actions in range, logprobs <= 0, 0 <= entropy <= log(A)
    assert actions.shape == (B,) and logprobs.shape == (B,) and entropy.shape == (B,)
    assert bool(jnp.all((actions >= 0) & (actions < A)))
    assert bool(jnp.all(logprobs <= 1e-5))
    assert bool(jnp.all((entropy >= -1e-5) & (entropy <= jnp.log(A) + 1e-4)))

    print("KERNEL_OK")
</pallas_src>

<mosaic_0001>
module attributes {stable_mosaic.version = 11 : i64} {
  func.func @agent_kernel(%arg0: i32, %arg1: memref<8x32xf32, #tpu.memory_space<vmem>>, %arg2: memref<8x8xf32, #tpu.memory_space<vmem>>, %arg3: memref<32x32xbf16, #tpu.memory_space<vmem>>, %arg4: memref<1x32xf32, #tpu.memory_space<vmem>>, %arg5: memref<32x8xbf16, #tpu.memory_space<vmem>>, %arg6: memref<1x8xf32, #tpu.memory_space<vmem>>, %arg7: memref<8x128xf32, #tpu.memory_space<vmem>>) attributes {dimension_semantics = [#tpu.dimension_semantics<parallel>], iteration_bounds = array<i64: 1>, scalar_prefetch = 0 : i64, scratch_operands = 0 : i64, tpu.core_type = #tpu.core_type<tc>, window_params = [{transform_indices = @transform_0, window_bounds = array<i64: 8, 32>}, {transform_indices = @transform_1, window_bounds = array<i64: 8, 8>}, {pipeline_mode = #tpu.pipeline_mode<synchronous>, transform_indices = @transform_2, window_bounds = array<i64: 32, 32>}, {pipeline_mode = #tpu.pipeline_mode<synchronous>, transform_indices = @transform_3, window_bounds = array<i64: 1, 32>}, {pipeline_mode = #tpu.pipeline_mode<synchronous>, transform_indices = @transform_4, window_bounds = array<i64: 32, 8>}, {pipeline_mode = #tpu.pipeline_mode<synchronous>, transform_indices = @transform_5, window_bounds = array<i64: 1, 8>}, {transform_indices = @transform_6, window_bounds = array<i64: 8, 128>}]} {
    %c0 = arith.constant 0 : index
    %c0_0 = arith.constant 0 : index
    %0 = vector.load %arg1[%c0, %c0_0] : memref<8x32xf32, #tpu.memory_space<vmem>>, vector<8x32xf32>
    %1 = arith.truncf %0 : vector<8x32xf32> to vector<8x32xbf16>
    %c0_1 = arith.constant 0 : index
    %c0_2 = arith.constant 0 : index
    %2 = vector.load %arg3[%c0_1, %c0_2] : memref<32x32xbf16, #tpu.memory_space<vmem>>, vector<32x32xbf16>
    %cst = arith.constant dense<0.000000e+00> : vector<8x32xf32>
    %3 = tpu.matmul %1, %2, %cst {dimension_numbers = #tpu.dot_dimension_numbers<[1], [0], [0], [1], [0, 0, 1, 1], [], []>} : vector<8x32xbf16>, vector<32x32xbf16>, vector<8x32xf32> -> vector<8x32xf32>
    %c0_3 = arith.constant 0 : index
    %c0_4 = arith.constant 0 : index
    %4 = vector.load %arg4[%c0_3, %c0_4] : memref<1x32xf32, #tpu.memory_space<vmem>>, vector<1x32xf32>
    %5 = vector.broadcast %4 : vector<1x32xf32> to vector<8x32xf32>
    %6 = arith.addf %3, %5 : vector<8x32xf32>
    %cst_5 = arith.constant 0.000000e+00 : f32
    %7 = vector.broadcast %cst_5 : f32 to vector<8x32xf32>
    %8 = arith.maximumf %6, %7 : vector<8x32xf32>
    %9 = arith.truncf %8 : vector<8x32xf32> to vector<8x32xbf16>
    %c0_6 = arith.constant 0 : index
    %c0_7 = arith.constant 0 : index
    %10 = vector.load %arg5[%c0_6, %c0_7] : memref<32x8xbf16, #tpu.memory_space<vmem>>, vector<32x8xbf16>
    %cst_8 = arith.constant dense<0.000000e+00> : vector<8x8xf32>
    %11 = tpu.matmul %9, %10, %cst_8 {dimension_numbers = #tpu.dot_dimension_numbers<[1], [0], [0], [1], [0, 0, 1, 1], [], []>} : vector<8x32xbf16>, vector<32x8xbf16>, vector<8x8xf32> -> vector<8x8xf32>
    %c0_9 = arith.constant 0 : index
    %c0_10 = arith.constant 0 : index
    %12 = vector.load %arg6[%c0_9, %c0_10] : memref<1x8xf32, #tpu.memory_space<vmem>>, vector<1x8xf32>
    %13 = vector.broadcast %12 : vector<1x8xf32> to vector<8x8xf32>
    %14 = arith.addf %11, %13 : vector<8x8xf32>
    %cst_11 = arith.constant dense<0xFF800000> : vector<8xf32>
    %15 = vector.multi_reduction <maximumf>, %14, %cst_11 [1] : vector<8x8xf32> to vector<8xf32>
    %16 = vector.shape_cast %15 : vector<8xf32> to vector<8x1xf32>
    %17 = vector.broadcast %16 : vector<8x1xf32> to vector<8x8xf32>
    %18 = arith.subf %14, %17 : vector<8x8xf32>
    %19 = math.exp %18 : vector<8x8xf32>
    %cst_12 = arith.constant dense<0.000000e+00> : vector<8xf32>
    %20 = vector.multi_reduction <add>, %19, %cst_12 [1] : vector<8x8xf32> to vector<8xf32>
    %21 = vector.shape_cast %20 : vector<8xf32> to vector<8x1xf32>
    %22 = math.log %21 : vector<8x1xf32>
    %23 = vector.broadcast %22 : vector<8x1xf32> to vector<8x8xf32>
    %24 = arith.subf %18, %23 : vector<8x8xf32>
    %25 = vector.broadcast %21 : vector<8x1xf32> to vector<8x8xf32>
    %26 = arith.divf %19, %25 : vector<8x8xf32>
    %27 = arith.mulf %26, %24 : vector<8x8xf32>
    %cst_13 = arith.constant dense<0.000000e+00> : vector<8xf32>
    %28 = vector.multi_reduction <add>, %27, %cst_13 [1] : vector<8x8xf32> to vector<8xf32>
    %29 = vector.shape_cast %28 : vector<8xf32> to vector<8x1xf32>
    %cst_14 = arith.constant 0.000000e+00 : f32
    %30 = vector.broadcast %cst_14 : f32 to vector<8x1xf32>
    %31 = arith.subf %30, %29 : vector<8x1xf32>
    %c0_15 = arith.constant 0 : index
    %c0_16 = arith.constant 0 : index
    %32 = vector.load %arg2[%c0_15, %c0_16] : memref<8x8xf32, #tpu.memory_space<vmem>>, vector<8x8xf32>
    %33 = arith.addf %14, %32 : vector<8x8xf32>
    %34 = tpu.iota {dimensions = array<i32: 1>} : vector<8x8xi32>
    %cst_17 = arith.constant dense<0xFF800000> : vector<8xf32>
    %35 = vector.multi_reduction <maximumf>, %33, %cst_17 [1] : vector<8x8xf32> to vector<8xf32>
    %36 = vector.shape_cast %35 : vector<8xf32> to vector<8x1xf32>
    %37 = vector.broadcast %36 : vector<8x1xf32> to vector<8x8xf32>
    %38 = arith.cmpf oge, %33, %37 : vector<8x8xf32>
    %c8_i32 = arith.constant 8 : i32
    %39 = vector.broadcast %c8_i32 : i32 to vector<8x8xi32>
    %40 = arith.select %38, %34, %39 : vector<8x8xi1>, vector<8x8xi32>
    %cst_18 = arith.constant dense<2147483647> : vector<8xi32>
    %41 = vector.multi_reduction <minsi>, %40, %cst_18 [1] : vector<8x8xi32> to vector<8xi32>
    %42 = vector.shape_cast %41 : vector<8xi32> to vector<8x1xi32>
    %43 = vector.broadcast %42 : vector<8x1xi32> to vector<8x8xi32>
    %44 = arith.cmpi eq, %34, %43 : vector<8x8xi32>
    %45 = arith.extui %44 : vector<8x8xi1> to vector<8x8xi32>
    %46 = arith.sitofp %45 : vector<8x8xi32> to vector<8x8xf32>
    %47 = arith.mulf %24, %46 : vector<8x8xf32>
    %cst_19 = arith.constant dense<0.000000e+00> : vector<8xf32>
    %48 = vector.multi_reduction <add>, %47, %cst_19 [1] : vector<8x8xf32> to vector<8xf32>
    %49 = vector.shape_cast %48 : vector<8xf32> to vector<8x1xf32>
    %50 = tpu.iota {dimensions = array<i32: 1>} : vector<8x128xi32>
    %c0_i32 = arith.constant 0 : i32
    %51 = vector.broadcast %c0_i32 : i32 to vector<8x128xi32>
    %52 = arith.cmpi eq, %50, %51 : vector<8x128xi32>
    %53 = arith.sitofp %42 : vector<8x1xi32> to vector<8x1xf32>
    %cst_20 = arith.constant 0.000000e+00 : f32
    %54 = vector.shape_cast %53 : vector<8x1xf32> to vector<8x1xf32>
    %55 = vector.broadcast %54 : vector<8x1xf32> to vector<8x128xf32>
    %56 = vector.broadcast %cst_20 : f32 to vector<8x128xf32>
    %57 = arith.select %52, %55, %56 : vector<8x128xi1>, vector<8x128xf32>
    %c1_i32 = arith.constant 1 : i32
    %58 = vector.broadcast %c1_i32 : i32 to vector<8x128xi32>
    %59 = arith.cmpi eq, %50, %58 : vector<8x128xi32>
    %cst_21 = arith.constant 0.000000e+00 : f32
    %60 = vector.shape_cast %49 : vector<8x1xf32> to vector<8x1xf32>
    %61 = vector.broadcast %60 : vector<8x1xf32> to vector<8x128xf32>
    %62 = vector.broadcast %cst_21 : f32 to vector<8x128xf32>
    %63 = arith.select %59, %61, %62 : vector<8x128xi1>, vector<8x128xf32>
    %64 = arith.addf %57, %63 : vector<8x128xf32>
    %c2_i32 = arith.constant 2 : i32
    %65 = vector.broadcast %c2_i32 : i32 to vector<8x128xi32>
    %66 = arith.cmpi eq, %50, %65 : vector<8x128xi32>
    %cst_22 = arith.constant 0.000000e+00 : f32
    %67 = vector.shape_cast %31 : vector<8x1xf32> to vector<8x1xf32>
    %68 = vector.broadcast %67 : vector<8x1xf32> to vector<8x128xf32>
    %69 = vector.broadcast %cst_22 : f32 to vector<8x128xf32>
    %70 = arith.select %66, %68, %69 : vector<8x128xi1>, vector<8x128xf32>
    %71 = arith.addf %64, %70 : vector<8x128xf32>
    %c0_23 = arith.constant 0 : index
    %c0_24 = arith.constant 0 : index
    %72 = vector.load %arg7[%c0_23, %c0_24] : memref<8x128xf32, #tpu.memory_space<vmem>>, vector<8x128xf32>
    tpu.vector_store %arg7[%c0_23, %c0_24], %71 {strides = array<i32>} : memref<8x128xf32, #tpu.memory_space<vmem>>, vector<8x128xf32>,
    return
  }
  func.func @transform_0(%arg0: i32) -> (i32, i32) {
    %c0_i32 = arith.constant 0 : i32
    %c0_i32_0 = arith.constant 0 : i32
    return %arg0, %c0_i32 : i32, i32
  }
  func.func @transform_1(%arg0: i32) -> (i32, i32) {
    %c0_i32 = arith.constant 0 : i32
    %c0_i32_0 = arith.constant 0 : i32
    return %arg0, %c0_i32 : i32, i32
  }
  func.func @transform_2(%arg0: i32) -> (i32, i32) {
    %c0_i32 = arith.constant 0 : i32
    %c0_i32_0 = arith.constant 0 : i32
    %c0_i32_1 = arith.constant 0 : i32
    return %c0_i32, %c0_i32_0 : i32, i32
  }
  func.func @transform_3(%arg0: i32) -> (i32, i32) {
    %c0_i32 = arith.constant 0 : i32
    %c0_i32_0 = arith.constant 0 : i32
    %c0_i32_1 = arith.constant 0 : i32
    return %c0_i32, %c0_i32_0 : i32, i32
  }
  func.func @transform_4(%arg0: i32) -> (i32, i32) {
    %c0_i32 = arith.constant 0 : i32
    %c0_i32_0 = arith.constant 0 : i32
    %c0_i32_1 = arith.constant 0 : i32
    return %c0_i32, %c0_i32_0 : i32, i32
  }
  func.func @transform_5(%arg0: i32) -> (i32, i32) {
    %c0_i32 = arith.constant 0 : i32
    %c0_i32_0 = arith.constant 0 : i32
    %c0_i32_1 = arith.constant 0 : i32
    return %c0_i32, %c0_i32_0 : i32, i32
  }
  func.func @transform_6(%arg0: i32) -> (i32, i32) {
    %c0_i32 = arith.constant 0 : i32
    %c0_i32_0 = arith.constant 0 : i32
    return %arg0, %c0_i32 : i32, i32
  }
}

</mosaic_0001>

<bundles_post_ra>
// kernel: tpu_custom_call.1
= control target key start
LH: loop header
LB: loop body
LE: loop exit
PB: predicated region body
PF: predicated region fallthrough
CT: control target
= control target key end

     0   :  { %11 = vsyncpa [#allocation3], 0  ;;  %s440_s0 = inlined_call_operand.vmem [shape: f32[8,32], index: 0, kind: input, shape index: {}]   ;;  %s441_s1 = inlined_call_operand.hbm [shape: f32[8,8], index: 1, kind: input, shape index: {}]   ;;  %s442_s2 = inlined_call_operand.vmem [shape: bf16[32,32], index: 2, kind: input, shape index: {}]   ;;  %s443_s3 = inlined_call_operand.vmem [shape: f32[1,32], index: 3, kind: input, shape index: {}]   ;;  %s444_s4 = inlined_call_operand.vmem [shape: bf16[32,8], index: 4, kind: input, shape index: {}]   ;;  %s445_s5 = inlined_call_operand.vmem [shape: f32[1,8], index: 5, kind: input, shape index: {}]   ;;  %s446_s6 = inlined_call_operand.hbm [shape: f32[8,128], index: 6, kind: output, shape index: {}]  }
   0x1   :  { %12 = vsyncpa [#allocation4], 0  ;;  %s343_s21 = smov [#allocation2]   ;;  %s295_s25 = scalar_lea.hbm %s441_s1, 128 }
   0x2   :  { %s21_s22 = sshll.u32 %s343_s21, 4  ;;  %p296_p0 = scmp.ne.s32.totalorder %s441_s1, %s295_s25  ;;  %s22_s22 = int_to_ptr.vmem [resolvable:$true] %s21_s22 }
   0x3   :  { %p299_p1 = scmp.lt.u32.totalorder %s295_s25, %s441_s1 }
   0x5   :  { %p301_p2 = pnand %p299_p1, %p296_p0 }
   0x7   :  { %304 = shalt.err (!%p301_p2)
}
   0x8   :  { %s305_s30 = scalar_lea.vmem %s22_s22, 128  ;;  %p310_p4 = scmp.lt.s32.totalorder %s22_s22, %s22_s22 }
   0x9   :  { %p306_p3 = scmp.ne.s32.totalorder %s22_s22, %s305_s30  ;;  %p311_p5 = scmp.lt.s32.totalorder %s305_s30, %s305_s30 }
   0xb   :  { %p312_p6 = por %p311_p5, %p310_p4 }
   0xd   :  { %p313_p7 = pnand %p312_p6, %p306_p3 }
   0xf   :  { %316 = shalt.err (!%p313_p7)
}
  0x10   :  { %24 = dma.hbm_to_vmem [thread:$0]  %s441_s1, 128, %s22_s22, [#allocation3]  }
  0x11   :  { %339 = dma.done.wait [#allocation3], 128  }
  0x12   :  { %340 = vsyncadd [#allocation3], 4294967168  ;;  %v344_v0 = vmov 0.0   ;;  %vm345_vm0 = vmmov 0   ;;  %v285_v1 = vld [vmem:[%s442_s2] sm:$0xff]   ;;  %v286_v2 = vld [vmem:[%s442_s2 + $0x8] sm:$0xff]   ;;  %v196_v25 = vlaneseq }
  0x13   :  { %265 = vmatprep.subr.bf16.mxu0 %v344_v0  ;;  %269 = vmatprep.mubr.msk.bf16.mxu0 %vm345_vm0, %v344_v0  ;;  %v37_v3 = vld [vmem:[%s440_s0] sm:$0xff]  ;;  %vm62_vm1 = vcmask 261120   ;;  %v288_v6 = vld [vmem:[%s444_s4 + $0x8] sm:$0xff]   ;;  %vm174_vm2 = vcmask 64512  }
  0x14   :  { %273 = vmatprep.subr.bf16.mxu1 %v344_v0  ;;  %277 = vmatprep.mubr.msk.bf16.mxu1 %vm345_vm0, %v344_v0  ;;  %v38_v4 = vpack.c.bf16 %v37_v3, %v37_v3  ;;  %v287_v5 = vld [vmem:[%s444_s4] sm:$0xff]   ;;  %v197_v26 = vand.u32 127, %v196_v25 }
  0x15   :  { %266 = vmatpush3.bf16.msra.mxu0 %v285_v1  ;;  %274 = vmatpush3.bf16.msra.mxu1 %v287_v5  ;;  %v250_v7 = vld [vmem:[%s443_s3] ss:$0 sm:$0xff]  ;;  %s346_s3 = smov [#allocation5]  }
  0x16   :  { %267 = vmatprep.subr.bf16.mxu0 %v344_v0  ;;  %275 = vmatprep.subr.bf16.mxu1 %v344_v0  ;;  %v254_v15 = vld [vmem:[%s445_s5] ss:$0 sm:$0xff]  ;;  %vm225_vm6 = vcmp.eq.s32.totalorder %v197_v26, 0  ;;  %vm228_vm7 = vcmp.eq.s32.totalorder %v197_v26, 1  ;;  %vm231_vm8 = vcmp.eq.s32.totalorder %v197_v26, 2  ;;  %s241_s4 = sshll.u32 %s346_s3, 4  ;;  %s242_s4 = int_to_ptr.vmem [resolvable:$true] %s241_s4 }
  0x17   :  { %v194_v17 = vld [vmem:[#allocation2] sm:$0xff]  ;;  %s317_s5 = scalar_lea.vmem %s242_s4, 128  ;;  %p322_p9 = scmp.lt.s32.totalorder %s242_s4, %s242_s4 }
  0x18   :  { %p318_p8 = scmp.ne.s32.totalorder %s242_s4, %s317_s5  ;;  %p323_p10 = scmp.lt.s32.totalorder %s317_s5, %s317_s5 }
  0x19   :  { %268 = vmatpush3.bf16.msra.mxu0 %v286_v2  ;;  %276 = vmatpush3.bf16.msra.mxu1 %v288_v6 }
  0x1a   :  { %p324_p11 = por %p323_p10, %p322_p9 }
  0x1c   :  { %270 = vmatmul.mubr.msk.bf16.vlgmr.msra.gmra.mrb[0].mxu0 %vm62_vm1, %v38_v4  ;;  %p325_p12 = pnand %p324_p11, %p318_p8 }
  0xef   :  { %v100_v8 = vpop.f32.mrb[0].mxu0 }
  0xf0   :  { %v101_v9 = vadd.f32 %v250_v7, %v100_v8  ;;  %v271_v10 = vpop.f32.mrb[1].mxu0 }
  0xf1   :  { %v103_v11 = vpop.f32.mrb[2].mxu0 }
  0xf2   :  { %v106_v12 = vmax.f32 %v101_v9, 0.0  ;;  %v272_v13 = vpop.f32.mrb[3].mxu0 }
  0xf4   :  { %v107_v14 = vpack.c.bf16 %v106_v12, %v106_v12 }
  0xf6   :  { %278 = vmatmul.mubr.msk.bf16.vlgmr.msra.gmra.mrb[0].mxu1 %vm62_vm1, %v107_v14 }
 0x1c9   :  { %v168_v16 = vpop.f32.mrb[0].mxu1 }
 0x1ca   :  { %v169_v18 = vadd.f32 %v254_v15, %v168_v16  ;;  %v279_v19 = vpop.f32.mrb[1].mxu1 }
 0x1cb   :  { %v171_v20 = vpop.f32.mrb[2].mxu1 }
 0x1cc   :  { %v280_v21 = vpop.f32.mrb[3].mxu1  ;;  %v195_v22 = vadd.f32 %v194_v17, %v169_v18  ;;  %v175_v24 = vsel %vm174_vm2, %v169_v18, -inf }
 0x1ce   :  { %v198_v23 = vsel %vm174_vm2, %v195_v22, -inf }
 0x1cf   :  { %199 = vmax.xlane.f32.xlu0 %v198_v23 }
 0x1d3   :  { %176 = vmax.xlane.f32.xlu0 %v175_v24 }
 0x25c   :  { %v200_v27 = vpop.xlane.xlu0 %199 }
 0x25d   :  { %vm201_vm3 = vcmp.ge.f32.partialorder %v195_v22, %v200_v27 }
 0x25e   :  { %v202_v28 = vsel %vm201_vm3, %v197_v26, 8 }
 0x25f   :  { %v203_v29 = vsel %vm174_vm2, %v202_v28, 2147483647 }
 0x260   :  { %v177_v30 = vpop.xlane.xlu0 %176  ;;  %v205_v31 = vshra.s32 %v203_v29, 16  ;;  %v204_v37 = vand.u32 65535, %v203_v29 }
 0x261   :  { %v178_v32 = vsub.f32 %v169_v18, %v177_v30 }
 0x262   :  { %v207_v33 = vcvt.s32.f32 %v205_v31  ;;  %v206_v39 = vcvt.s32.f32 %v204_v37 }
 0x263   :  { %v179_v34 = vmul.f32 1.442695, %v178_v32 }
 0x264   :  { %208 = vmin.xlane.f32.xlu1 %v207_v33 }
 0x265   :  { %289 = vpow2.f32 %v179_v34 }
 0x26f   :  { %v290_v35 = vpop.eup %289 }
 0x270   :  { %v181_v36 = vsel %vm174_vm2, %v290_v35, 0.0 }
 0x271   :  { %182 = vadd.xlane.f32.xlu1 %v181_v36 }
 0x2f1   :  { %v209_v38 = vpop.xlane.xlu1 %208 }
 0x2f2   :  { %vm210_vm4 = vcmp.eq.f32.partialorder %v207_v33, %v209_v38  ;;  %v215_v49 = vcvt.f32.s32 %v209_v38 }
 0x2f3   :  { %v211_v40 = vsel %vm210_vm4, %v206_v39, inf }
 0x2f4   :  { %212 = vmin.xlane.f32.xlu0 %v211_v40  ;;  %v216_v51 = vshll.u32 %v215_v49, 16 }
 0x2fe   :  { %v183_v41 = vpop.xlane.xlu1 %182 }
 0x2ff   :  { %291 = vlog2.f32 %v183_v41 }
 0x300   :  { %293 = vrcp.f32 %v183_v41 }
 0x309   :  { %v292_v42 = vpop.eup %291 }
 0x30a   :  { %v294_v43 = vpop.eup %293  ;;  %v185_v44 = vmul.f32 0.6931472, %v292_v42 }
 0x30b   :  { %v188_v46 = vmul.f32 %v294_v43, %v290_v35 }
 0x30c   :  { %v186_v45 = vsub.f32 %v178_v32, %v185_v44 }
 0x30e   :  { %v189_v47 = vmul.f32 %v188_v46, %v186_v45 }
 0x310   :  { %v190_v48 = vsel %vm174_vm2, %v189_v47, 0.0 }
 0x311   :  { %191 = vadd.xlane.f32.xlu1 %v190_v48 }
 0x381   :  { %v213_v50 = vpop.xlane.xlu0 %212 }
 0x382   :  { %v214_v52 = vcvt.f32.s32 %v213_v50 }
 0x384   :  { %v217_v53 = vadd.s32 %v216_v51, %v214_v52 }
 0x386   :  { %vm218_vm5 = vcmp.eq.s32.totalorder %v197_v26, %v217_v53  ;;  %v226_v58 = vcvt.s32.f32 %v217_v53 }
 0x387   :  { %v258_v54 = vsel %vm218_vm5, 1.0, %v344_v0 }
 0x388   :  { %v221_v55 = vmul.f32 %v258_v54, %v186_v45  ;;  %v227_v61 = vsel %vm225_vm6, %v226_v58, 0.0 }
 0x38a   :  { %v222_v56 = vsel %vm174_vm2, %v221_v55, 0.0 }
 0x38b   :  { %223 = vadd.xlane.f32.xlu0 %v222_v56 }
 0x39e   :  { %v192_v57 = vpop.xlane.xlu1 %191 }
 0x39f   :  { %v193_v59 = vsub.f32 0.0, %v192_v57 }
 0x3a1   :  { %v232_v1 = vsel %vm231_vm8, %v193_v59, 0.0 }
 0x418   :  { %v224_v60 = vpop.xlane.xlu0 %223 }
 0x419   :  { %v229_v62 = vsel %vm228_vm7, %v224_v60, 0.0 }
 0x41a   :  { %v230_v63 = vadd.f32 %v229_v62, %v227_v61 }
 0x41c   :  { %v233_v2 = vadd.f32 %v232_v1, %v230_v63 }
 0x41e   :  { %234 = vst [vmem:[#allocation5] sm:$0xff] %v233_v2 }
 0x41f   :  { %328 = shalt.err (!%p325_p12)
}
 0x420   :  { %s329_s22 = scalar_lea.hbm %s446_s6, 128 }
 0x421   :  { %p330_p13 = scmp.ne.s32.totalorder %s446_s6, %s329_s22  ;;  %p333_p0 = scmp.lt.u32.totalorder %s329_s22, %s446_s6 }
 0x423   :  { %p335_p1 = pnand %p333_p0, %p330_p13 }
 0x425   :  { %338 = shalt.err (!%p335_p1)
}
 0x426   :  { %244 = dma.vmem_to_hbm [thread:$0]  %s242_s4, 128, %s446_s6, [#allocation4]  }
 0x427   :  { %341 = dma.done.wait [#allocation4], 128  }
 0x428   :  { %342 = vsyncadd [#allocation4], 4294967168 }
 0x429   :  { %248 = vsyncpa [#allocation3], 1 }
 0x42a   :  { %249 = vsyncpa [#allocation4], 1 }

</bundles_post_ra>
